<compile_context>
chip_gen: v6e
topology: v6e:2x2x1
jax: 0.10.0
libtpu: 0.0.40
codegen_flags: <defaults>
</compile_context>

<pallas_src>
import jax
import jax.numpy as jnp
from jax import lax
from jax.experimental import pallas as pl
from jax.experimental.pallas import tpu as pltpu

BN_EPS = 1e-5
LANE = 128
VMEM_LIMIT_BYTES = 32 * 1024 * 1024  # ample for the tile_m sweep; <= physical on all chips


def _round_up(x, m):
    return ((x + m - 1) // m) * m


# ---------------------------------------------------------------------------
# Pass 1: packed conv matmul -> f32 conv intermediate + per-lane sum / sumsq.
# Grid: (num_shards [parallel], tiles_per_shard [arbitrary]).
# ---------------------------------------------------------------------------
def _conv_stats_kernel(p_ref, w_ref, conv_ref, sum_ref, sumsq_ref):
    # p_ref     : (tile_rows, Kp)    bf16  packed im2col patch tile (G pixels/row)
    # w_ref     : (Kp, Wout)         bf16  block-diagonal fused conv weights (resident)
    # conv_ref  : (tile_rows, Wout)  f32   raw packed conv output (consumed by pass 2)
    # sum_ref   : (1, 1, Wout)       f32   resident per-shard accumulator
    # sumsq_ref : (1, 1, Wout)       f32   resident per-shard accumulator
    @pl.when(pl.program_id(1) == 0)
    def _init():
        sum_ref[...] = jnp.zeros_like(sum_ref)
        sumsq_ref[...] = jnp.zeros_like(sumsq_ref)

    acc = jnp.dot(p_ref[...], w_ref[...], preferred_element_type=jnp.float32)
    conv_ref[...] = acc.astype(conv_ref.dtype)
    s = jnp.sum(acc, axis=0, keepdims=True)            # (1, Wout)
    sq = jnp.sum(acc * acc, axis=0, keepdims=True)
    sum_ref[...] += s[None]
    sumsq_ref[...] += sq[None]


# ---------------------------------------------------------------------------
# Pass 2: pure VPU BN scale/shift + ReLU on the packed conv intermediate.
# ---------------------------------------------------------------------------
def _bn_relu_kernel(y_ref, scale_ref, shift_ref, o_ref):
    y = y_ref[...] * scale_ref[...] + shift_ref[...]
    o_ref[...] = jnp.maximum(y, 0.0).astype(o_ref.dtype)


def conv_block_forward(x_nchw, conv_w, conv_b, bn_gamma, bn_beta,
                       *, tile_m=2048, compute_dtype=jnp.bfloat16):
    """ConvBlock forward: (N, Cin, H, W) f32 -> (N, Cout, H, W) f32."""
    del conv_b  # cancels exactly under training-mode BatchNorm (see header)

    N, Cin, H, W = x_nchw.shape
    Cout, _, KH, KW = conv_w.shape
    M = N * H * W
    K = KH * KW * Cin

    # Output-lane packing: G output pixels per packed 128-lane row.
    if Cout <= LANE and LANE % Cout == 0:
        G = LANE // Cout
        per_group = Cout
    else:
        G = 1
        per_group = _round_up(Cout, LANE)
    Wout = G * per_group                 # packed output width (usually exactly 128)
    Kp = _round_up(G * K, LANE)          # packed contraction width

    M_rows = pl.cdiv(M, G)
    # tile_m is in pixels; tile_rows in packed rows; multiple of 16 (bf16 sublanes).
    tile_rows = max(16, ((tile_m // G) // 16) * 16)
    tile_rows = min(tile_rows, _round_up(M_rows, 16))
    num_tiles = pl.cdiv(M_rows, tile_rows)
    num_shards = 2 if num_tiles >= 2 else 1   # v7x: split pass-1 stats over 2 TCs
    tiles_per_shard = pl.cdiv(num_tiles, num_shards)
    Mp_rows = num_shards * tiles_per_shard * tile_rows
    Mp = Mp_rows * G

    # ---- wrapper glue: layout + packed im2col + block-diagonal weights -------
    x_nhwc = jnp.transpose(x_nchw, (0, 2, 3, 1))
    x_pad = jnp.pad(x_nhwc, ((0, 0), (1, 1), (1, 1), (0, 0)))          # pad=(1,1)
    cols = [x_pad[:, kh:kh + H, kw:kw + W, :]
            for kh in range(KH) for kw in range(KW)]
    patches = jnp.concatenate(cols, axis=-1).reshape(M, K)
    # zero-padded pixel rows contribute 0 to the conv output and the BN sums
    patches = jnp.pad(patches, ((0, Mp - M), (0, 0)))
    patches = patches.reshape(Mp_rows, G * K)
    patches = jnp.pad(patches, ((0, 0), (0, Kp - G * K))).astype(compute_dtype)

    w_pix = jnp.transpose(conv_w, (2, 3, 1, 0)).reshape(K, Cout)
    w_pix = jnp.pad(w_pix, ((0, 0), (0, per_group - Cout)))
    w_packed = jnp.kron(jnp.eye(G, dtype=w_pix.dtype), w_pix)          # (G*K, Wout)
    w_packed = jnp.pad(w_packed, ((0, Kp - G * K), (0, 0))).astype(compute_dtype)

    # ---- pass 1: conv matmul -> f32 intermediate + per-lane sum / sumsq ------
    flops1 = 2 * Mp_rows * Kp * Wout
    bytes1 = (patches.size * patches.dtype.itemsize
              + w_packed.size * w_packed.dtype.itemsize
              + Mp_rows * Wout * 4
              + 2 * num_shards * Wout * 4)
    conv_out, sum_sh, sumsq_sh = pl.pallas_call(
        _conv_stats_kernel,
        out_shape=(jax.ShapeDtypeStruct((Mp_rows, Wout), jnp.float32),
                   jax.ShapeDtypeStruct((num_shards, 1, Wout), jnp.float32),
                   jax.ShapeDtypeStruct((num_shards, 1, Wout), jnp.float32)),
        grid=(num_shards, tiles_per_shard),
        in_specs=[
            pl.BlockSpec((tile_rows, Kp),
                         lambda c, i: (c * tiles_per_shard + i, 0)),
            pl.BlockSpec((Kp, Wout), lambda c, i: (0, 0)),
        ],
        out_specs=(
            pl.BlockSpec((tile_rows, Wout),
                         lambda c, i: (c * tiles_per_shard + i, 0)),
            pl.BlockSpec((1, 1, Wout), lambda c, i: (c, 0, 0)),
            pl.BlockSpec((1, 1, Wout), lambda c, i: (c, 0, 0)),
        ),
        compiler_params=pltpu.CompilerParams(
            dimension_semantics=("parallel", "arbitrary"),
            vmem_limit_bytes=VMEM_LIMIT_BYTES),
        cost_estimate=pl.CostEstimate(flops=int(flops1), transcendentals=0,
                                      bytes_accessed=int(bytes1)),
    )(patches, w_packed)

    # ---- tiny JAX glue: fold BN into per-lane scale / shift (f32) ------------
    sum_c = jnp.sum(sum_sh, axis=(0, 1)).reshape(G, per_group).sum(axis=0)[:Cout]
    sumsq_c = jnp.sum(sumsq_sh, axis=(0, 1)).reshape(G, per_group).sum(axis=0)[:Cout]
    inv_m = 1.0 / float(M)                    # true M (padded rows add zero)
    mean = sum_c * inv_m
    # TODO(synk): E[x^2]-E[x]^2 can cancel catastrophically at training-scale M;
    # switch to a mean-first second pass (or shifted accumulation) if needed.
    var = jnp.maximum(sumsq_c * inv_m - mean * mean, 0.0)   # biased batch var
    inv_std = lax.rsqrt(var + BN_EPS)
    scale_c = bn_gamma.astype(jnp.float32) * inv_std
    shift_c = bn_beta.astype(jnp.float32) - mean * scale_c
    scale_w = jnp.tile(jnp.pad(scale_c, (0, per_group - Cout)), G).reshape(1, Wout)
    shift_w = jnp.tile(jnp.pad(shift_c, (0, per_group - Cout)), G).reshape(1, Wout)

    # ---- pass 2: pure VPU normalize + ReLU, lane-dense in / out --------------
    total_tiles = Mp_rows // tile_rows
    flops2 = 2 * Mp_rows * Wout
    bytes2 = Mp_rows * Wout * 4 * 2 + 2 * Wout * 4
    out_flat = pl.pallas_call(
        _bn_relu_kernel,
        out_shape=jax.ShapeDtypeStruct((Mp_rows, Wout), jnp.float32),
        grid=(total_tiles,),
        in_specs=[
            pl.BlockSpec((tile_rows, Wout), lambda i: (i, 0)),
            pl.BlockSpec((1, Wout), lambda i: (0, 0)),
            pl.BlockSpec((1, Wout), lambda i: (0, 0)),
        ],
        out_specs=pl.BlockSpec((tile_rows, Wout), lambda i: (i, 0)),
        compiler_params=pltpu.CompilerParams(
            dimension_semantics=("parallel",),
            vmem_limit_bytes=VMEM_LIMIT_BYTES),
        cost_estimate=pl.CostEstimate(flops=int(flops2), transcendentals=0,
                                      bytes_accessed=int(bytes2)),
    )(conv_out, scale_w, shift_w)

    # Un-pack: (Mp_rows, G*per_group) is row-major identical to (Mp, per_group).
    out = out_flat.reshape(Mp_rows * G, per_group)[:M, :Cout]
    out_nhwc = out.reshape(N, H, W, Cout)
    return jnp.transpose(out_nhwc, (0, 3, 1, 2))


def _reference(x_nchw, conv_w, conv_b, bn_gamma, bn_beta):
    """Pure-JAX f32 reference (conv + training-mode BN + ReLU)."""
    y = lax.conv_general_dilated(
        x_nchw, conv_w, window_strides=(1, 1), padding=((1, 1), (1, 1)),
        dimension_numbers=("NCHW", "OIHW", "NCHW"),
        precision=lax.Precision.HIGHEST)
    y = y + conv_b[None, :, None, None]
    mean = jnp.mean(y, axis=(0, 2, 3), keepdims=True)
    var = jnp.mean((y - mean) ** 2, axis=(0, 2, 3), keepdims=True)  # biased
    y = (y - mean) * lax.rsqrt(var + BN_EPS)
    y = y * bn_gamma[None, :, None, None] + bn_beta[None, :, None, None]
    return jnp.maximum(y, 0.0)


if __name__ == "__main__":
    # Small shapes consistent with the module.
    N, Cin, Cout, H, W = 2, 4, 8, 16, 16
    KH, KW = 3, 3

    key = jax.random.PRNGKey(0)
    k_x, k_w, k_b = jax.random.split(key, 3)

    x = jax.random.normal(k_x, (N, Cin, H, W), dtype=jnp.float32)

    # Conv2d-like fan-in init; BatchNorm2d default affine params.
    fan_in = Cin * KH * KW
    bound = 1.0 / (fan_in ** 0.5)
    conv_w = jax.random.uniform(k_w, (Cout, Cin, KH, KW),
                                minval=-bound, maxval=bound, dtype=jnp.float32)
    conv_b = jax.random.uniform(k_b, (Cout,),
                                minval=-bound, maxval=bound, dtype=jnp.float32)
    bn_gamma = jnp.ones((Cout,), jnp.float32)
    bn_beta = jnp.zeros((Cout,), jnp.float32)

    fwd = jax.jit(conv_block_forward)
    out = jax.block_until_ready(fwd(x, conv_w, conv_b, bn_gamma, bn_beta))

    ref = jax.block_until_ready(_reference(x, conv_w, conv_b, bn_gamma, bn_beta))
    # Tolerance sized for bf16 MXU inputs against the f32 reference; structural
    # errors would show up at O(0.1-1).
    if not jnp.allclose(out, ref, rtol=2e-2, atol=2e-2):
        raise AssertionError("Pallas ConvBlock does not match reference")

    print("KERNEL_OK")
</pallas_src>

<mosaic_0001>
module attributes {stable_mosaic.version = 11 : i64} {
  func.func @_conv_stats_kernel(%arg0: i32, %arg1: i32, %arg2: memref<32x640xbf16, #tpu.memory_space<vmem>>, %arg3: memref<640x128xbf16, #tpu.memory_space<vmem>>, %arg4: memref<32x128xf32, #tpu.memory_space<vmem>>, %arg5: memref<1x1x128xf32, #tpu.memory_space<vmem>>, %arg6: memref<1x1x128xf32, #tpu.memory_space<vmem>>) attributes {dimension_semantics = [#tpu.dimension_semantics<parallel>, #tpu.dimension_semantics<arbitrary>], iteration_bounds = array<i64: 1, 1>, scalar_prefetch = 0 : i64, scratch_operands = 0 : i64, tpu.core_type = #tpu.core_type<tc>, window_params = [{transform_indices = @transform_0, window_bounds = array<i64: 32, 640>}, {pipeline_mode = #tpu.pipeline_mode<synchronous>, transform_indices = @transform_1, window_bounds = array<i64: 640, 128>}, {transform_indices = @transform_2, window_bounds = array<i64: 32, 128>}, {transform_indices = @transform_3, window_bounds = array<i64: 1, 1, 128>}, {transform_indices = @transform_4, window_bounds = array<i64: 1, 1, 128>}]} {
    %c0_i32 = arith.constant 0 : i32
    %0 = arith.cmpi eq, %arg1, %c0_i32 : i32
    %1 = arith.extui %0 : i1 to i32
    %c0_i32_0 = arith.constant 0 : i32
    %2 = arith.cmpi ne, %1, %c0_i32_0 : i32
    scf.if %2 {
      %cst_20 = arith.constant 0.000000e+00 : f32
      %20 = vector.broadcast %cst_20 : f32 to vector<1x1x128xf32>
      %c0_21 = arith.constant 0 : index
      %c0_22 = arith.constant 0 : index
      %c0_23 = arith.constant 0 : index
      %21 = vector.load %arg5[%c0_21, %c0_22, %c0_23] : memref<1x1x128xf32, #tpu.memory_space<vmem>>, vector<1x1x128xf32>
      tpu.vector_store %arg5[%c0_21, %c0_22, %c0_23], %20 {strides = array<i32>} : memref<1x1x128xf32, #tpu.memory_space<vmem>>, vector<1x1x128xf32>,
      %cst_24 = arith.constant 0.000000e+00 : f32
      %22 = vector.broadcast %cst_24 : f32 to vector<1x1x128xf32>
      %c0_25 = arith.constant 0 : index
      %c0_26 = arith.constant 0 : index
      %c0_27 = arith.constant 0 : index
      %23 = vector.load %arg6[%c0_25, %c0_26, %c0_27] : memref<1x1x128xf32, #tpu.memory_space<vmem>>, vector<1x1x128xf32>
      tpu.vector_store %arg6[%c0_25, %c0_26, %c0_27], %22 {strides = array<i32>} : memref<1x1x128xf32, #tpu.memory_space<vmem>>, vector<1x1x128xf32>,
    } else {
    }
    %c0 = arith.constant 0 : index
    %c0_1 = arith.constant 0 : index
    %3 = vector.load %arg2[%c0, %c0_1] : memref<32x640xbf16, #tpu.memory_space<vmem>>, vector<32x640xbf16>
    %c0_2 = arith.constant 0 : index
    %c0_3 = arith.constant 0 : index
    %4 = vector.load %arg3[%c0_2, %c0_3] : memref<640x128xbf16, #tpu.memory_space<vmem>>, vector<640x128xbf16>
    %cst = arith.constant dense<0.000000e+00> : vector<32x128xf32>
    %5 = tpu.matmul %3, %4, %cst {dimension_numbers = #tpu.dot_dimension_numbers<[1], [0], [0], [1], [0, 0, 1, 1], [], []>} : vector<32x640xbf16>, vector<640x128xbf16>, vector<32x128xf32> -> vector<32x128xf32>
    %c0_4 = arith.constant 0 : index
    %c0_5 = arith.constant 0 : index
    %6 = vector.load %arg4[%c0_4, %c0_5] : memref<32x128xf32, #tpu.memory_space<vmem>>, vector<32x128xf32>
    tpu.vector_store %arg4[%c0_4, %c0_5], %5 {strides = array<i32>} : memref<32x128xf32, #tpu.memory_space<vmem>>, vector<32x128xf32>,
    %cst_6 = arith.constant dense<0.000000e+00> : vector<128xf32>
    %7 = vector.multi_reduction <add>, %5, %cst_6 [0] : vector<32x128xf32> to vector<128xf32>
    %8 = vector.shape_cast %7 : vector<128xf32> to vector<1x128xf32>
    %9 = arith.mulf %5, %5 : vector<32x128xf32>
    %cst_7 = arith.constant dense<0.000000e+00> : vector<128xf32>
    %10 = vector.multi_reduction <add>, %9, %cst_7 [0] : vector<32x128xf32> to vector<128xf32>
    %11 = vector.shape_cast %10 : vector<128xf32> to vector<1x128xf32>
    %c0_8 = arith.constant 0 : index
    %c0_9 = arith.constant 0 : index
    %c0_10 = arith.constant 0 : index
    %12 = vector.load %arg5[%c0_8, %c0_9, %c0_10] : memref<1x1x128xf32, #tpu.memory_space<vmem>>, vector<1x1x128xf32>
    %13 = vector.shape_cast %8 : vector<1x128xf32> to vector<1x1x128xf32>
    %14 = arith.addf %12, %13 : vector<1x1x128xf32>
    %c0_11 = arith.constant 0 : index
    %c0_12 = arith.constant 0 : index
    %c0_13 = arith.constant 0 : index
    %15 = vector.load %arg5[%c0_11, %c0_12, %c0_13] : memref<1x1x128xf32, #tpu.memory_space<vmem>>, vector<1x1x128xf32>
    tpu.vector_store %arg5[%c0_11, %c0_12, %c0_13], %14 {strides = array<i32>} : memref<1x1x128xf32, #tpu.memory_space<vmem>>, vector<1x1x128xf32>,
    %c0_14 = arith.constant 0 : index
    %c0_15 = arith.constant 0 : index
    %c0_16 = arith.constant 0 : index
    %16 = vector.load %arg6[%c0_14, %c0_15, %c0_16] : memref<1x1x128xf32, #tpu.memory_space<vmem>>, vector<1x1x128xf32>
    %17 = vector.shape_cast %11 : vector<1x128xf32> to vector<1x1x128xf32>
    %18 = arith.addf %16, %17 : vector<1x1x128xf32>
    %c0_17 = arith.constant 0 : index
    %c0_18 = arith.constant 0 : index
    %c0_19 = arith.constant 0 : index
    %19 = vector.load %arg6[%c0_17, %c0_18, %c0_19] : memref<1x1x128xf32, #tpu.memory_space<vmem>>, vector<1x1x128xf32>
    tpu.vector_store %arg6[%c0_17, %c0_18, %c0_19], %18 {strides = array<i32>} : memref<1x1x128xf32, #tpu.memory_space<vmem>>, vector<1x1x128xf32>,
    return
  }
  func.func @transform_0(%arg0: i32, %arg1: i32) -> (i32, i32) {
    %c1_i32 = arith.constant 1 : i32
    %0 = arith.muli %arg0, %c1_i32 : i32
    %1 = arith.addi %0, %arg1 : i32
    %c0_i32 = arith.constant 0 : i32
    %c0_i32_0 = arith.constant 0 : i32
    return %1, %c0_i32 : i32, i32
  }
  func.func @transform_1(%arg0: i32, %arg1: i32) -> (i32, i32) {
    %c0_i32 = arith.constant 0 : i32
    %c0_i32_0 = arith.constant 0 : i32
    %c0_i32_1 = arith.constant 0 : i32
    return %c0_i32, %c0_i32_0 : i32, i32
  }
  func.func @transform_2(%arg0: i32, %arg1: i32) -> (i32, i32) {
    %c1_i32 = arith.constant 1 : i32
    %0 = arith.muli %arg0, %c1_i32 : i32
    %1 = arith.addi %0, %arg1 : i32
    %c0_i32 = arith.constant 0 : i32
    %c0_i32_0 = arith.constant 0 : i32
    return %1, %c0_i32 : i32, i32
  }
  func.func @transform_3(%arg0: i32, %arg1: i32) -> (i32, i32, i32) {
    %c0_i32 = arith.constant 0 : i32
    %c0_i32_0 = arith.constant 0 : i32
    %c0_i32_1 = arith.constant 0 : i32
    return %arg0, %c0_i32, %c0_i32_0 : i32, i32, i32
  }
  func.func @transform_4(%arg0: i32, %arg1: i32) -> (i32, i32, i32) {
    %c0_i32 = arith.constant 0 : i32
    %c0_i32_0 = arith.constant 0 : i32
    %c0_i32_1 = arith.constant 0 : i32
    return %arg0, %c0_i32, %c0_i32_0 : i32, i32, i32
  }
}

module attributes {stable_mosaic.version = 11 : i64} {
  func.func @_bn_relu_kernel(%arg0: i32, %arg1: memref<32x128xf32, #tpu.memory_space<vmem>>, %arg2: memref<1x128xf32, #tpu.memory_space<vmem>>, %arg3: memref<1x128xf32, #tpu.memory_space<vmem>>, %arg4: memref<32x128xf32, #tpu.memory_space<vmem>>) attributes {dimension_semantics = [#tpu.dimension_semantics<parallel>], iteration_bounds = array<i64: 1>, scalar_prefetch = 0 : i64, scratch_operands = 0 : i64, tpu.core_type = #tpu.core_type<tc>, window_params = [{transform_indices = @transform_0, window_bounds = array<i64: 32, 128>}, {pipeline_mode = #tpu.pipeline_mode<synchronous>, transform_indices = @transform_1, window_bounds = array<i64: 1, 128>}, {pipeline_mode = #tpu.pipeline_mode<synchronous>, transform_indices = @transform_2, window_bounds = array<i64: 1, 128>}, {transform_indices = @transform_3, window_bounds = array<i64: 32, 128>}]} {
    %c0 = arith.constant 0 : index
    %c0_0 = arith.constant 0 : index
    %0 = vector.load %arg1[%c0, %c0_0] : memref<32x128xf32, #tpu.memory_space<vmem>>, vector<32x128xf32>
    %c0_1 = arith.constant 0 : index
    %c0_2 = arith.constant 0 : index
    %1 = vector.load %arg2[%c0_1, %c0_2] : memref<1x128xf32, #tpu.memory_space<vmem>>, vector<1x128xf32>
    %2 = vector.broadcast %1 : vector<1x128xf32> to vector<32x128xf32>
    %3 = arith.mulf %0, %2 : vector<32x128xf32>
    %c0_3 = arith.constant 0 : index
    %c0_4 = arith.constant 0 : index
    %4 = vector.load %arg3[%c0_3, %c0_4] : memref<1x128xf32, #tpu.memory_space<vmem>>, vector<1x128xf32>
    %5 = vector.broadcast %4 : vector<1x128xf32> to vector<32x128xf32>
    %6 = arith.addf %3, %5 : vector<32x128xf32>
    %cst = arith.constant 0.000000e+00 : f32
    %7 = vector.broadcast %cst : f32 to vector<32x128xf32>
    %8 = arith.maximumf %6, %7 : vector<32x128xf32>
    %c0_5 = arith.constant 0 : index
    %c0_6 = arith.constant 0 : index
    %9 = vector.load %arg4[%c0_5, %c0_6] : memref<32x128xf32, #tpu.memory_space<vmem>>, vector<32x128xf32>
    tpu.vector_store %arg4[%c0_5, %c0_6], %8 {strides = array<i32>} : memref<32x128xf32, #tpu.memory_space<vmem>>, vector<32x128xf32>,
    return
  }
  func.func @transform_0(%arg0: i32) -> (i32, i32) {
    %c0_i32 = arith.constant 0 : i32
    %c0_i32_0 = arith.constant 0 : i32
    return %arg0, %c0_i32 : i32, i32
  }
  func.func @transform_1(%arg0: i32) -> (i32, i32) {
    %c0_i32 = arith.constant 0 : i32
    %c0_i32_0 = arith.constant 0 : i32
    %c0_i32_1 = arith.constant 0 : i32
    return %c0_i32, %c0_i32_0 : i32, i32
  }
  func.func @transform_2(%arg0: i32) -> (i32, i32) {
    %c0_i32 = arith.constant 0 : i32
    %c0_i32_0 = arith.constant 0 : i32
    %c0_i32_1 = arith.constant 0 : i32
    return %c0_i32, %c0_i32_0 : i32, i32
  }
  func.func @transform_3(%arg0: i32) -> (i32, i32) {
    %c0_i32 = arith.constant 0 : i32
    %c0_i32_0 = arith.constant 0 : i32
    return %arg0, %c0_i32 : i32, i32
  }
}

</mosaic_0001>

<bundles_post_ra>
// kernel: mul.4
= control target key start
LH: loop header
LB: loop body
LE: loop exit
PB: predicated region body
PF: predicated region fallthrough
CT: control target
= control target key end

     0   :  { %vm47_vm0 = vcmask 64512   ;;  %s185_s0 = inlined_call_operand.vmem [shape: f32[3,3,4,8], index: 0, kind: input, shape index: {}]   ;;  %s186_s1 = inlined_call_operand.vmem [shape: f32[36,8], index: 1, kind: output, shape index: {}]  }
   0x1   :  { %v96_v0 = vld [vmem:[%s185_s0 + $0x20] sm:$0xf]  ;;  %v97_v1 = vld [vmem:[%s185_s0 + $0x1c] sm:$0xf]  ;;  %v98_v2 = vld [vmem:[%s185_s0 + $0x18] sm:$0xf] }
   0x2   :  { %9 = vst [vmem:[#allocation0 + $0x10] sm:$0xf] %v96_v0  ;;  %14 = vst [vmem:[#allocation0 + $0x40] sm:$0xf] %v97_v1  ;;  %v99_v3 = vld [vmem:[%s185_s0 + $0x14] sm:$0xf] }
   0x3   :  { %19 = vst [vmem:[#allocation0 + $0x28] sm:$0xf] %v98_v2  ;;  %v100_v4 = vld [vmem:[%s185_s0 + $0x10] sm:$0xf]  ;;  %v101_v5 = vld [vmem:[%s185_s0 + $0xc] sm:$0xf] }
   0x4   :  { %24 = vst [vmem:[#allocation0 + $0x30] sm:$0xf] %v99_v3  ;;  %29 = vst [vmem:[#allocation0 + $0x20] sm:$0xf] %v100_v4  ;;  %v102_v6 = vld [vmem:[%s185_s0 + $0x8] sm:$0xf] }
   0x5   :  { %34 = vst [vmem:[#allocation0 + $0x18] sm:$0xf] %v101_v5  ;;  %v103_v7 = vld [vmem:[%s185_s0 + $0x4] sm:$0xf]  ;;  %v44_v8 = vld [vmem:[%s185_s0] sm:$0xf] }
   0x6   :  { %39 = vst [vmem:[#allocation0] sm:$0xf] %v102_v6  ;;  %43 = vst [vmem:[#allocation0 + $0x8] sm:$0xf] %v103_v7 }
   0x7   :  { %45 = vst [vmem:[#allocation0 + $0x38] sm:$0xf] %v44_v8 }
   0x9   :  { %v80_v10 = vld [vmem:[#allocation0 + $0x40] sm:$0xf]   ;;  %v85_v11 = vld [vmem:[#allocation0 + $0x10] sm:$0xf]  }
   0xa   :  { %v75_v9 = vld [vmem:[#allocation0 + $0x28] sm:$0xf]   ;;  %110 = vst.msk [vmem:[%s186_s1 + $0x1c] sm:$0xf] %vm47_vm0, %v80_v10   ;;  %111 = vst.msk [vmem:[%s186_s1 + $0x20] sm:$0xf] %vm47_vm0, %v85_v11  }
   0xb   :  { %v65_v13 = vld [vmem:[#allocation0 + $0x20] sm:$0xf]   ;;  %v70_v14 = vld [vmem:[#allocation0 + $0x30] sm:$0xf]   ;;  %109 = vst.msk [vmem:[%s186_s1 + $0x18] sm:$0xf] %vm47_vm0, %v75_v9  }
   0xc   :  { %v60_v12 = vld [vmem:[#allocation0 + $0x18] sm:$0xf]   ;;  %107 = vst.msk [vmem:[%s186_s1 + $0x10] sm:$0xf] %vm47_vm0, %v65_v13   ;;  %108 = vst.msk [vmem:[%s186_s1 + $0x14] sm:$0xf] %vm47_vm0, %v70_v14  }
   0xd   :  { %v50_v16 = vld [vmem:[#allocation0 + $0x8] sm:$0xf]   ;;  %v55_v17 = vld [vmem:[#allocation0] sm:$0xf]   ;;  %106 = vst.msk [vmem:[%s186_s1 + $0xc] sm:$0xf] %vm47_vm0, %v60_v12  }
   0xe   :  { %v46_v15 = vld [vmem:[#allocation0 + $0x38] sm:$0xf]   ;;  %104 = vst.msk [vmem:[%s186_s1 + $0x4] sm:$0xf] %vm47_vm0, %v50_v16   ;;  %105 = vst.msk [vmem:[%s186_s1 + $0x8] sm:$0xf] %vm47_vm0, %v55_v17  }
   0xf   :  { %48 = vst.msk [vmem:[%s186_s1] sm:$0xf] %vm47_vm0, %v46_v15  }

// kernel: tile.13
= control target key start
LH: loop header
LB: loop body
LE: loop exit
PB: predicated region body
PF: predicated region fallthrough
CT: control target
= control target key end

     0   :  { %s28_s0 = inlined_call_operand.vmem [shape: f32[8], index: 0, kind: input, shape index: {}]   ;;  %s29_s1 = inlined_call_operand.vmem [shape: f32[16,8], index: 1, kind: output, shape index: {}]  }
   0x1   :  { %v4_v0 = vld [vmem:[%s28_s0] ss:$0 sm:$0xff] }
   0x2   :  { %5 = vst [vmem:[%s29_s1] sm:$0xff] %v4_v0  ;;  %8 = vst [vmem:[%s29_s1 + $0x8] sm:$0xff] %v4_v0 }

// kernel: tile.14
= control target key start
LH: loop header
LB: loop body
LE: loop exit
PB: predicated region body
PF: predicated region fallthrough
CT: control target
= control target key end

     0   :  { %s133_s10 = smov 120   ;;  %s134_s11 = smov 104   ;;  %vm3_vm0 = vcmask 64512   ;;  %vm9_vm1 = vcmask 1048512   ;;  %vm15_vm2 = vcmask 982912   ;;  %vm21_vm3 = vcmask 917312   ;;  %s209_s0 = inlined_call_operand.vmem [shape: f32[16,8], index: 0, kind: input, shape index: {}]   ;;  %s210_s1 = inlined_call_operand.vmem [shape: f32[1,128], index: 1, kind: output, shape index: {}]  }
   0x1   :  { %v103_v0 = vld [vmem:[%s209_s0 + $0xf] sm:$0x1]   ;;  %v105_v1 = vld [vmem:[%s209_s0 + $0xd] sm:$0x1]   ;;  %v104_v2 = vld [vmem:[%s209_s0 + $0xe] sm:$0x1]  }
   0x2   :  { %7 = vrot.lane.b32.xlu0 %v103_v0, %s133_s10  ;;  %19 = vrot.lane.b32.xlu1 %v105_v1, %s134_s11  ;;  %v106_v3 = vld [vmem:[%s209_s0 + $0xc] sm:$0x1]   ;;  %s135_s16 = smov 112   ;;  %s136_s17 = smov 96   ;;  %v107_v4 = vld [vmem:[%s209_s0 + $0xb] sm:$0x1]  }
   0x3   :  { %v108_v5 = vld [vmem:[%s209_s0 + $0xa] sm:$0x1]   ;;  %v2_v6 = vld [vmem:[%s209_s0] sm:$0x1]   ;;  %s137_s24 = smov 88   ;;  %s138_s25 = smov 80  }
   0x4   :  { %4 = vst.msk [vmem:[#allocation0] sm:$0x1] %vm3_vm0, %v2_v6   ;;  %v109_v7 = vld [vmem:[%s209_s0 + $0x9] sm:$0x1]   ;;  %v110_v8 = vld [vmem:[%s209_s0 + $0x8] sm:$0x1]  }
   0x5   :  { %s139_s30 = smov 72   ;;  %s140_s2 = smov 64   ;;  %v111_v9 = vld [vmem:[%s209_s0 + $0x7] sm:$0x1]   ;;  %v112_v10 = vld [vmem:[%s209_s0 + $0x6] sm:$0x1]  }
   0x6   :  { %13 = vrot.lane.b32.xlu0 %v104_v2, %s135_s16  ;;  %25 = vrot.lane.b32.xlu1 %v106_v3, %s136_s17  ;;  %s141_s7 = smov 56   ;;  %s142_s8 = smov 48   ;;  %v113_v11 = vld [vmem:[%s209_s0 + $0x5] sm:$0x1]   ;;  %v114_v12 = vld [vmem:[%s209_s0 + $0x4] sm:$0x1]  }
   0x7   :  { %s143_s13 = smov 40   ;;  %s144_s14 = smov 32   ;;  %v115_v13 = vld [vmem:[%s209_s0 + $0x3] sm:$0x1]   ;;  %v116_v14 = vld [vmem:[%s209_s0 + $0x2] sm:$0x1]  }
   0x8   :  { %s145_s19 = smov 24   ;;  %s146_s20 = smov 16   ;;  %v117_v15 = vld [vmem:[%s209_s0 + $0x1] sm:$0x1]   ;;  %vm27_vm4 = vcmask 851712   ;;  %vm33_vm5 = vcmask 786112  }
   0x9   :  { %s147_s0 = smov 8   ;;  %vm39_vm6 = vcmask 720512   ;;  %vm45_vm7 = vcmask 654912   ;;  %vm51_vm8 = vcmask 589312   ;;  %vm57_vm9 = vcmask 523712  }
   0xa   :  { %31 = vrot.lane.b32.xlu0 %v107_v4, %s137_s24  ;;  %37 = vrot.lane.b32.xlu1 %v108_v5, %s138_s25  ;;  %vm63_vm10 = vcmask 458112   ;;  %vm69_vm11 = vcmask 392512   ;;  %vm75_vm12 = vcmask 326912   ;;  %vm81_vm13 = vcmask 261312  }
   0xb   :  { %vm87_vm14 = vcmask 195712   ;;  %vm93_vm15 = vcmask 130112  }
   0xe   :  { %43 = vrot.lane.b32.xlu0 %v109_v7, %s139_s30  ;;  %49 = vrot.lane.b32.xlu1 %v110_v8, %s140_s2 }
  0x12   :  { %55 = vrot.lane.b32.xlu0 %v111_v9, %s141_s7  ;;  %61 = vrot.lane.b32.xlu1 %v112_v10, %s142_s8 }
  0x16   :  { %67 = vrot.lane.b32.xlu0 %v113_v11, %s143_s13  ;;  %73 = vrot.lane.b32.xlu1 %v114_v12, %s144_s14 }
  0x1a   :  { %79 = vrot.lane.b32.xlu0 %v115_v13, %s145_s19  ;;  %85 = vrot.lane.b32.xlu1 %v116_v14, %s146_s20 }
  0x1e   :  { %91 = vrot.lane.b32.xlu0 %v117_v15, %s147_s0 }
  0x74   :  { %v8_v16 = vpop.permute.xlu0 %7   ;;  %v20_v17 = vpop.permute.xlu1 %19  }
  0x75   :  { %10 = vst.msk [vmem:[#allocation0] sm:$0x1] %vm9_vm1, %v8_v16  }
  0x78   :  { %v14_v18 = vpop.permute.xlu0 %13   ;;  %v26_v19 = vpop.permute.xlu1 %25  }
  0x79   :  { %16 = vst.msk [vmem:[#allocation0] sm:$0x1] %vm15_vm2, %v14_v18  }
  0x7a   :  { %22 = vst.msk [vmem:[#allocation0] sm:$0x1] %vm21_vm3, %v20_v17  }
  0x7b   :  { %28 = vst.msk [vmem:[#allocation0] sm:$0x1] %vm27_vm4, %v26_v19  }
  0x7c   :  { %v32_v20 = vpop.permute.xlu0 %31   ;;  %v38_v21 = vpop.permute.xlu1 %37  }
  0x7d   :  { %34 = vst.msk [vmem:[#allocation0] sm:$0x1] %vm33_vm5, %v32_v20  }
  0x7e   :  { %40 = vst.msk [vmem:[#allocation0] sm:$0x1] %vm39_vm6, %v38_v21  }
  0x80   :  { %v44_v22 = vpop.permute.xlu0 %43   ;;  %v50_v23 = vpop.permute.xlu1 %49  }
  0x81   :  { %46 = vst.msk [vmem:[#allocation0] sm:$0x1] %vm45_vm7, %v44_v22  }
  0x82   :  { %52 = vst.msk [vmem:[#allocation0] sm:$0x1] %vm51_vm8, %v50_v23  }
  0x84   :  { %v56_v24 = vpop.permute.xlu0 %55   ;;  %v62_v25 = vpop.permute.xlu1 %61  }
  0x85   :  { %58 = vst.msk [vmem:[#allocation0] sm:$0x1] %vm57_vm9, %v56_v24  }
  0x86   :  { %64 = vst.msk [vmem:[#allocation0] sm:$0x1] %vm63_vm10, %v62_v25  }
  0x88   :  { %v68_v26 = vpop.permute.xlu0 %67   ;;  %v74_v27 = vpop.permute.xlu1 %73  }
  0x89   :  { %70 = vst.msk [vmem:[#allocation0] sm:$0x1] %vm69_vm11, %v68_v26  }
  0x8a   :  { %76 = vst.msk [vmem:[#allocation0] sm:$0x1] %vm75_vm12, %v74_v27  }
  0x8c   :  { %v80_v28 = vpop.permute.xlu0 %79   ;;  %v86_v29 = vpop.permute.xlu1 %85  }
  0x8d   :  { %82 = vst.msk [vmem:[#allocation0] sm:$0x1] %vm81_vm13, %v80_v28  }
  0x8e   :  { %88 = vst.msk [vmem:[#allocation0] sm:$0x1] %vm87_vm14, %v86_v29  }
  0x90   :  { %v92_v30 = vpop.permute.xlu0 %91  }
  0x91   :  { %94 = vst.msk [vmem:[#allocation0] sm:$0x1] %vm93_vm15, %v92_v30  }
  0x98   :  { %v99_v31 = vld [vmem:[#allocation0] sm:$0x1] }
  0x99   :  { %102 = vst [vmem:[%s210_s1] sm:$0x1] %v99_v31 }

// kernel: conv_block_forward.3
= control target key start
LH: loop header
LB: loop body
LE: loop exit
PB: predicated region body
PF: predicated region fallthrough
CT: control target
= control target key end

     0   :  { %s104_s0 = inlined_call_operand.vmem [shape: f32[32,128], index: 0, kind: input, shape index: {}]   ;;  %s105_s1 = inlined_call_operand.vmem [shape: f32[1,128], index: 1, kind: input, shape index: {}]   ;;  %s106_s2 = inlined_call_operand.vmem [shape: f32[1,128], index: 2, kind: input, shape index: {}]   ;;  %s107_s3 = inlined_call_operand.vmem [shape: f32[32,128], index: 3, kind: output, shape index: {}]  }
   0x1   :  { %v14_v0 = vld [vmem:[%s104_s0] sm:$0xff]  ;;  %v15_v4 = vld [vmem:[%s104_s0 + $0x8] sm:$0xff]  ;;  %v16_v5 = vld [vmem:[%s104_s0 + $0x10] sm:$0xff] }
   0x2   :  { %v52_v1 = vld [vmem:[%s105_s1] ss:$0 sm:$0xff]  ;;  %v17_v6 = vld [vmem:[%s104_s0 + $0x18] sm:$0xff] }
   0x3   :  { %v53_v2 = vld [vmem:[%s106_s2] ss:$0 sm:$0xff]  ;;  %v25_v3 = vmul.f32 %v52_v1, %v14_v0  ;;  %v26_v7 = vmul.f32 %v52_v1, %v15_v4  ;;  %v27_v8 = vmul.f32 %v52_v1, %v16_v5  ;;  %v28_v9 = vmul.f32 %v52_v1, %v17_v6 }
   0x5   :  { %v36_v10 = vadd.f32 %v53_v2, %v25_v3  ;;  %v37_v11 = vadd.f32 %v53_v2, %v26_v7  ;;  %v38_v12 = vadd.f32 %v53_v2, %v27_v8  ;;  %v39_v13 = vadd.f32 %v53_v2, %v28_v9 }
   0x7   :  { %v40_v14 = vmax.f32 %v36_v10, 0.0  ;;  %v41_v15 = vmax.f32 %v37_v11, 0.0  ;;  %v42_v16 = vmax.f32 %v38_v12, 0.0  ;;  %v43_v17 = vmax.f32 %v39_v13, 0.0 }
   0x9   :  { %44 = vst [vmem:[%s107_s3] sm:$0xff] %v40_v14  ;;  %45 = vst [vmem:[%s107_s3 + $0x8] sm:$0xff] %v41_v15 }
   0xa   :  { %46 = vst [vmem:[%s107_s3 + $0x10] sm:$0xff] %v42_v16  ;;  %47 = vst [vmem:[%s107_s3 + $0x18] sm:$0xff] %v43_v17 }

// kernel: conv_block_forward.2
= control target key start
LH: loop header
LB: loop body
LE: loop exit
PB: predicated region body
PF: predicated region fallthrough
CT: control target
= control target key end

     0   :  { %v854_v50 = vmov 0.0   ;;  %s1060_s1 = inlined_call_operand.vmem [shape: bf16[640,128], index: 1, kind: input, shape index: {}]   ;;  %s1061_s0 = inlined_call_operand.vmem [shape: bf16[32,640], index: 0, kind: input, shape index: {}]   ;;  %s1062_s3 = inlined_call_operand.vmem [shape: f32[1,1,128], index: 3, kind: output, shape index: {1}]   ;;  %s1063_s4 = inlined_call_operand.vmem [shape: f32[1,1,128], index: 4, kind: output, shape index: {2}]   ;;  %s1064_s2 = inlined_call_operand.vmem [shape: f32[32,128], index: 2, kind: output, shape index: {0}]  }
   0x1   :  { %v800_v0 = vld [vmem:[%s1060_s1 + $0x78] sm:$0xff]   ;;  %v804_v4 = vld [vmem:[%s1060_s1 + $0x70] sm:$0xff]   ;;  %v808_v8 = vld [vmem:[%s1060_s1 + $0x68] sm:$0xff]   ;;  %58 = vst [vmem:[%s1062_s3] sm:$0x1] %v854_v50 }
   0x2   :  { %v801_v1 = vld [vmem:[%s1060_s1 + $0xf8] sm:$0xff]   ;;  %713 = vmatprep.subr.bf16.mxu0 %v800_v0  ;;  %v805_v5 = vld [vmem:[%s1060_s1 + $0xf0] sm:$0xff]   ;;  %v809_v9 = vld [vmem:[%s1060_s1 + $0xe8] sm:$0xff]   ;;  %59 = vst [vmem:[%s1063_s4] sm:$0x1] %v854_v50 }
   0x3   :  { %v802_v2 = vld [vmem:[%s1060_s1 + $0x38] sm:$0xff]   ;;  %741 = vmatprep.subr.bf16.mxu1 %v801_v1  ;;  %v806_v6 = vld [vmem:[%s1060_s1 + $0x30] sm:$0xff]   ;;  %v810_v10 = vld [vmem:[%s1060_s1 + $0x28] sm:$0xff]  }
   0x4   :  { %v803_v3 = vld [vmem:[%s1060_s1 + $0xb8] sm:$0xff]   ;;  %714 = vmatpush3.bf16.msra.mxu0 %v802_v2  ;;  %v807_v7 = vld [vmem:[%s1060_s1 + $0xb0] sm:$0xff]   ;;  %v811_v11 = vld [vmem:[%s1060_s1 + $0xa8] sm:$0xff]  }
   0x5   :  { %742 = vmatpush3.bf16.msra.mxu1 %v803_v3  ;;  %715 = vmatprep.subr.bf16.mxu0 %v804_v4  ;;  %v812_v12 = vld [vmem:[%s1060_s1 + $0x60] sm:$0xff]   ;;  %v816_v16 = vld [vmem:[%s1060_s1 + $0x58] sm:$0xff]   ;;  %v820_v20 = vld [vmem:[%s1060_s1 + $0x50] sm:$0xff]  }
   0x6   :  { %743 = vmatprep.subr.bf16.mxu1 %v805_v5  ;;  %v813_v13 = vld [vmem:[%s1060_s1 + $0xe0] sm:$0xff]   ;;  %v817_v17 = vld [vmem:[%s1060_s1 + $0xd8] sm:$0xff]   ;;  %v821_v21 = vld [vmem:[%s1060_s1 + $0xd0] sm:$0xff]  }
   0x7   :  { %v814_v14 = vld [vmem:[%s1060_s1 + $0x20] sm:$0xff]   ;;  %v818_v18 = vld [vmem:[%s1060_s1 + $0x18] sm:$0xff]   ;;  %v822_v22 = vld [vmem:[%s1060_s1 + $0x10] sm:$0xff]  }
   0x8   :  { %716 = vmatpush3.bf16.msra.mxu0 %v806_v6  ;;  %v815_v15 = vld [vmem:[%s1060_s1 + $0xa0] sm:$0xff]   ;;  %v819_v19 = vld [vmem:[%s1060_s1 + $0x98] sm:$0xff]   ;;  %v823_v23 = vld [vmem:[%s1060_s1 + $0x90] sm:$0xff]  }
   0x9   :  { %744 = vmatpush3.bf16.msra.mxu1 %v807_v7  ;;  %717 = vmatprep.subr.bf16.mxu0 %v808_v8  ;;  %v824_v24 = vld [vmem:[%s1060_s1 + $0x48] sm:$0xff]   ;;  %v828_v28 = vld [vmem:[%s1060_s1 + $0x40] sm:$0xff]   ;;  %v838_v36 = vld [vmem:[%s1060_s1 + $0x138] sm:$0xff]  }
   0xa   :  { %745 = vmatprep.subr.bf16.mxu1 %v809_v9  ;;  %v825_v25 = vld [vmem:[%s1060_s1 + $0xc8] sm:$0xff]   ;;  %v829_v29 = vld [vmem:[%s1060_s1 + $0xc0] sm:$0xff]   ;;  %v839_v37 = vld [vmem:[%s1060_s1 + $0x130] sm:$0xff]  }
   0xb   :  { %v826_v26 = vld [vmem:[%s1060_s1 + $0x8] sm:$0xff]   ;;  %v830_v30 = vld [vmem:[%s1060_s1] sm:$0xff]   ;;  %v842_v45 = vld [vmem:[%s1060_s1 + $0x118] sm:$0xff]  }
   0xc   :  { %718 = vmatpush3.bf16.msra.mxu0 %v810_v10  ;;  %v827_v27 = vld [vmem:[%s1060_s1 + $0x88] sm:$0xff]   ;;  %v831_v31 = vld [vmem:[%s1060_s1 + $0x80] sm:$0xff]   ;;  %v849_v46 = vld [vmem:[%s1060_s1 + $0x110] sm:$0xff]  }
   0xd   :  { %746 = vmatpush3.bf16.msra.mxu1 %v811_v11  ;;  %719 = vmatprep.subr.bf16.mxu0 %v812_v12  ;;  %v832_v32 = vld [vmem:[%s1061_s0] ss:$20 sps:$4 sm:$0xff]   ;;  %v834_v33 = vld [vmem:[%s1061_s0 + $0x4] ss:$20 sps:$4 sm:$0xff]   ;;  %v835_v34 = vld [vmem:[%s1061_s0 + $0x8] ss:$20 sps:$4 sm:$0xff]  }
   0xe   :  { %747 = vmatprep.subr.bf16.mxu1 %v813_v13  ;;  %v837_v35 = vld [vmem:[%s1061_s0 + $0xc] ss:$20 sps:$4 sm:$0xff]   ;;  %476 = vmatprep.mubr.bf16.mxu0 %v834_v33  ;;  %v845_v40 = vld [vmem:[%s1061_s0 + $0x34] ss:$20 sps:$4 sm:$0xff]   ;;  %v848_v42 = vld [vmem:[%s1061_s0 + $0x30] ss:$20 sps:$4 sm:$0xff]  }
   0xf   :  { %525 = vmatprep.mubr.bf16.mxu1 %v837_v35  ;;  %v840_v38 = vld [vmem:[%s1060_s1 + $0x128] sm:$0xff]   ;;  %v841_v43 = vld [vmem:[%s1060_s1 + $0x120] sm:$0xff]  }
  0x10   :  { %720 = vmatpush3.bf16.msra.mxu0 %v814_v14  ;;  %v843_v39 = vld [vmem:[%s1061_s0 + $0x2c] ss:$20 sps:$4 sm:$0xff]   ;;  %v847_v41 = vld [vmem:[%s1061_s0 + $0x28] ss:$20 sps:$4 sm:$0xff]   ;;  %v852_v44 = vld [vmem:[%s1061_s0 + $0x10] ss:$20 sps:$4 sm:$0xff]  }
  0x11   :  { %748 = vmatpush3.bf16.msra.mxu1 %v815_v15  ;;  %721 = vmatprep.subr.bf16.mxu0 %v816_v16  ;;  %v850_v47 = vld [vmem:[%s1060_s1 + $0x108] sm:$0xff]   ;;  %v851_v48 = vld [vmem:[%s1060_s1 + $0x100] sm:$0xff]  }
  0x12   :  { %749 = vmatprep.subr.bf16.mxu1 %v817_v17  ;;  %v853_v49 = vld [vmem:[%s1061_s0 + $0x38] ss:$20 sps:$4 sm:$0xff]  }
  0x14   :  { %722 = vmatpush3.bf16.msra.mxu0 %v818_v18 }
  0x15   :  { %750 = vmatpush3.bf16.msra.mxu1 %v819_v19  ;;  %723 = vmatprep.subr.bf16.mxu0 %v820_v20 }
  0x16   :  { %751 = vmatprep.subr.bf16.mxu1 %v821_v21 }
  0x18   :  { %724 = vmatpush3.bf16.msra.mxu0 %v822_v22 }
  0x19   :  { %752 = vmatpush3.bf16.msra.mxu1 %v823_v23  ;;  %725 = vmatprep.subr.bf16.mxu0 %v824_v24 }
  0x1a   :  { %753 = vmatprep.subr.bf16.mxu1 %v825_v25 }
  0x1c   :  { %726 = vmatpush3.bf16.msra.mxu0 %v826_v26 }
  0x1d   :  { %754 = vmatpush3.bf16.msra.mxu1 %v827_v27  ;;  %727 = vmatprep.subr.bf16.mxu0 %v828_v28 }
  0x1e   :  { %755 = vmatprep.subr.bf16.mxu1 %v829_v29 }
  0x20   :  { %728 = vmatpush3.bf16.msra.mxu0 %v830_v30 }
  0x21   :  { %756 = vmatpush3.bf16.msra.mxu1 %v831_v31  ;;  %779 = vmatprep.subr.bf16.mxu0 %v838_v36 }
  0x23   :  { %477 = vmatmul.mubr.bf16.vlgmr.msra.gmra.mxu0 %v832_v32 }
  0x24   :  { %526 = vmatmul.mubr.bf16.vlgmr.msra.gmra.mxu1 %v835_v34  ;;  %780 = vmatpush3.bf16.msra.mxu0 %v838_v36 }
  0x25   :  { %781 = vmatprep.subr.bf16.mxu0 %v839_v37  ;;  %484 = vmatprep.mubr.bf16.mxu0 %v843_v39 }
  0x26   :  { %533 = vmatprep.mubr.bf16.mxu1 %v845_v40 }
  0x28   :  { %782 = vmatpush3.bf16.msra.mxu0 %v839_v37 }
  0x29   :  { %783 = vmatprep.subr.bf16.mxu0 %v840_v38 }
  0x2b   :  { %485 = vmatmul.mubr.bf16.gmra.mxu0 %v847_v41 }
  0x2c   :  { %534 = vmatmul.mubr.bf16.gmra.mxu1 %v848_v42  ;;  %784 = vmatpush3.bf16.msra.mxu0 %v840_v38  ;;  %v617_v42 = vld [vmem:[%s1062_s3] sm:$0x1] }
  0x2d   :  { %785 = vmatprep.subr.bf16.mxu0 %v841_v43  ;;  %795 = vmatprep.mubr.bf16.mxu0 %v852_v44 }
  0x30   :  { %786 = vmatpush3.bf16.msra.mxu0 %v841_v43 }
  0x31   :  { %787 = vmatprep.subr.bf16.mxu0 %v842_v45 }
  0x34   :  { %788 = vmatpush3.bf16.msra.mxu0 %v842_v45  ;;  %v620_v45 = vld [vmem:[%s1063_s4] sm:$0x1] }
  0x35   :  { %789 = vmatprep.subr.bf16.mxu0 %v849_v46 }
  0x38   :  { %790 = vmatpush3.bf16.msra.mxu0 %v849_v46 }
  0x39   :  { %791 = vmatprep.subr.bf16.mxu0 %v850_v47 }
  0x3c   :  { %792 = vmatpush3.bf16.msra.mxu0 %v850_v47 }
  0x3d   :  { %793 = vmatprep.subr.bf16.mxu0 %v851_v48 }
  0x40   :  { %794 = vmatpush3.bf16.msra.mxu0 %v851_v48 }
  0x43   :  { %796 = vmatmul.mubr.bf16.vlgmr.msra.gmra.mxu0 %v853_v49 }
  0xe3   :  { %v729_v51 = vpop.f32.mrf.mxu0 }
  0xe4   :  { %v757_v52 = vpop.f32.mrf.mxu1 }
  0xe5   :  { %v730_v53 = vpop.f32.mrf.mxu0 }
  0xe6   :  { %v758_v54 = vpop.f32.mrf.mxu1  ;;  %v731_v5 = vadd.f32 %v730_v53, %v729_v51 }
  0xe7   :  { %v732_v55 = vpop.f32.mrf.mxu0  ;;  %v759_v6 = vadd.f32 %v758_v54, %v757_v52 }
  0xe8   :  { %v760_v56 = vpop.f32.mrf.mxu1 }
  0xe9   :  { %v733_v57 = vpop.f32.mrf.mxu0  ;;  %v528_v14 = vadd.f32 %v759_v6, %v731_v5 }
  0xea   :  { %v761_v58 = vpop.f32.mrf.mxu1  ;;  %v734_v11 = vadd.f32 %v733_v57, %v732_v55 }
  0xeb   :  { %v735_v59 = vpop.f32.mrf.mxu0  ;;  %v762_v12 = vadd.f32 %v761_v58, %v760_v56 }
  0xec   :  { %v763_v60 = vpop.f32.mrf.mxu1 }
  0xed   :  { %v736_v61 = vpop.f32.mrf.mxu0  ;;  %v531_v20 = vadd.f32 %v762_v12, %v734_v11 }
  0xee   :  { %v764_v62 = vpop.f32.mrf.mxu1  ;;  %v737_v1 = vadd.f32 %v736_v61, %v735_v59 }
  0xef   :  { %v738_v63 = vpop.f32.mrf.mxu0  ;;  %v765_v2 = vadd.f32 %v764_v62, %v763_v60 }
  0xf0   :  { %v766_v0 = vpop.f32.mrf.mxu1 }
  0xf1   :  { %v739_v3 = vpop.f32.mrf.mxu0  ;;  %v536_v9 = vadd.f32 %v765_v2, %v737_v1 }
  0xf2   :  { %v767_v4 = vpop.f32.mrf.mxu1  ;;  %v740_v7 = vadd.f32 %v739_v3, %v738_v63 }
  0xf3   :  { %v768_v8 = vadd.f32 %v767_v4, %v766_v0 }
  0xf5   :  { %v539_v17 = vadd.f32 %v768_v8, %v740_v7 }
 0x103   :  { %v797_v10 = vpop.f32.mrf.mxu0 }
 0x104   :  { %v585_v13 = vadd.f32 %v797_v10, %v536_v9 }
 0x105   :  { %v576_v15 = vpop.f32.mrf.mxu0 }
 0x106   :  { %593 = vst [vmem:[%s1064_s2 + $0x10] sm:$0xff] %v585_v13  ;;  %v577_v16 = vadd.f32 %v576_v15, %v528_v14  ;;  %v606_v26 = vmul.f32 %v585_v13, %v585_v13 }
 0x107   :  { %v798_v18 = vpop.f32.mrf.mxu0 }
 0x108   :  { %591 = vst [vmem:[%s1064_s2] sm:$0xff] %v577_v16  ;;  %v588_v19 = vadd.f32 %v798_v18, %v539_v17  ;;  %v604_v23 = vmul.f32 %v577_v16, %v577_v16 }
 0x109   :  { %v579_v21 = vpop.f32.mrf.mxu0 }
 0x10a   :  { %594 = vst [vmem:[%s1064_s2 + $0x18] sm:$0xff] %v588_v19  ;;  %v580_v22 = vadd.f32 %v579_v21, %v531_v20  ;;  %v607_v29 = vmul.f32 %v588_v19, %v588_v19 }
 0x10c   :  { %592 = vst [vmem:[%s1064_s2 + $0x8] sm:$0xff] %v580_v22  ;;  %v595_v24 = vadd.f32 %v580_v22, %v577_v16  ;;  %v605_v25 = vmul.f32 %v580_v22, %v580_v22 }
 0x10e   :  { %v596_v27 = vadd.f32 %v595_v24, %v585_v13  ;;  %v608_v28 = vadd.f32 %v605_v25, %v604_v23 }
 0x110   :  { %v597_v30 = vadd.f32 %v596_v27, %v588_v19  ;;  %v609_v31 = vadd.f32 %v608_v28, %v606_v26 }
 0x112   :  { %v598_v32 = vrot.slane %v597_v30, 4  ;;  %v610_v33 = vadd.f32 %v609_v31, %v607_v29 }
 0x114   :  { %v599_v34 = vadd.f32 %v598_v32, %v597_v30  ;;  %v611_v35 = vrot.slane %v610_v33, 4 }
 0x116   :  { %v600_v36 = vrot.slane %v599_v34, 2  ;;  %v612_v37 = vadd.f32 %v611_v35, %v610_v33 }
 0x118   :  { %v601_v38 = vadd.f32 %v600_v36, %v599_v34  ;;  %v613_v39 = vrot.slane %v612_v37, 2 }
 0x11a   :  { %v602_v40 = vrot.slane %v601_v38, 1  ;;  %v614_v41 = vadd.f32 %v613_v39, %v612_v37 }
 0x11c   :  { %v603_v43 = vadd.f32 %v602_v40, %v601_v38  ;;  %v615_v44 = vrot.slane %v614_v41, 1 }
 0x11e   :  { %v616_v46 = vadd.f32 %v615_v44, %v614_v41  ;;  %v618_v47 = vadd.f32 %v617_v42, %v603_v43 }
 0x120   :  { %619 = vst [vmem:[%s1062_s3] sm:$0x1] %v618_v47  ;;  %v621_v48 = vadd.f32 %v620_v45, %v616_v46 }
 0x122   :  { %622 = vst [vmem:[%s1063_s4] sm:$0x1] %v621_v48 }

</bundles_post_ra>
